<compile_context>
chip_gen: v5e
topology: v5e:2x2
jax: 0.10.0
libtpu: 0.0.40
codegen_flags: <defaults>
</compile_context>

<pallas_src>
import functools

import jax
import jax.numpy as jnp
from jax import lax
from jax.experimental import pallas as pl
from jax.experimental.pallas import tpu as pltpu

_EPS = 1e-12          # F.normalize default eps
_CLAMP_MIN = 0.0005
_CLAMP_MAX = 0.9995


def _round_up(x, m):
    return (x + m - 1) // m * m


def _balanced_tile(dim, tile_max, align):
    """Smallest aligned tile that covers `dim` in ceil(dim/tile_max) tiles."""
    tile_max = max(int(tile_max), align)
    num_tiles = -(-dim // tile_max)          # ceil
    tile = -(-dim // num_tiles)              # balanced tile size
    return _round_up(tile, align)


def _sim_min_loss_kernel(bg_ref, fg_ref, invb_ref, invf_ref, out_ref, *,
                         mxu_dtype):
    bg = bg_ref[...]                      # (tm, d) native dtype
    fg = fg_ref[...]                      # (tn, d) native dtype
    if mxu_dtype is not None:
        bg = bg.astype(mxu_dtype)
        fg = fg.astype(mxu_dtype)
    inv_bg = invb_ref[...]                # (tm, 1) f32, precomputed in wrapper
    inv_fg = invf_ref[...]                # (1, tn) f32, precomputed in wrapper
    tm = bg_ref.shape[0]                  # static; wrapper guarantees tm % 8 == 0

    # (tm, tn) inner products on the MXU; both contracting dims are the lane
    # (D) axis, so no transpose/relayout of fg is needed. f32 accumulation.
    sim = lax.dot_general(
        bg, fg,
        dimension_numbers=(((1,), (1,)), ((), ())),
        preferred_element_type=jnp.float32)

    # Strip-mined epilogue over (8, tn) slices: apply both row-norm scales,
    # clamp, -log.  Pairwise tree combine keeps the dependency chain short.
    parts = []
    for r in range(tm // 8):
        sl = slice(r * 8, (r + 1) * 8)
        s = sim[sl, :] * inv_bg[sl, :] * inv_fg
        s = jnp.clip(s, _CLAMP_MIN, _CLAMP_MAX)
        parts.append(-jnp.log(1.0 - s))
    while len(parts) > 1:
        nxt = [parts[a] + parts[a + 1] for a in range(0, len(parts) - 1, 2)]
        if len(parts) % 2:
            nxt.append(parts[-1])
        parts = nxt

    # Lane-dense (8, tn) partial sums; each (i, j) step owns its own output
    # block (no cross-step carry -> both grid axes are "parallel").
    out_ref[...] = parts[0]


def sim_min_loss(bg_feat, fg_feat, *, tm=256, tn=512, mxu_bf16=None):
    """bg_feat: (M, D), fg_feat: (N, D). Returns scalar f32 loss.

    tm / tn are tile-size maxima; actual tiles are balanced and (8,128)-aligned.
    """
    m, d = bg_feat.shape
    n, d2 = fg_feat.shape
    assert d == d2, "feature dims must match"

    # Balanced, aligned tiles (minimal pad waste); tm % 8 == 0, tn % 128 == 0.
    tm = _balanced_tile(m, tm, 8)
    tn = _balanced_tile(n, tn, 128)
    m_pad = _round_up(m, tm)
    n_pad = _round_up(n, tn)
    gi = m_pad // tm
    gj = n_pad // tn

    # Row inverse L2 norms, computed once (f32), applied post-matmul in-kernel.
    bg32 = bg_feat.astype(jnp.float32)
    fg32 = fg_feat.astype(jnp.float32)
    inv_bg = lax.rsqrt(jnp.maximum(
        jnp.sum(bg32 * bg32, axis=1, keepdims=True), _EPS * _EPS))    # (m, 1)
    inv_fg = lax.rsqrt(jnp.maximum(
        jnp.sum(fg32 * fg32, axis=1), _EPS * _EPS)).reshape(1, n)     # (1, n)

    # Pad rows/cols only (no D padding: blocks cover the full feature dim).
    bg_p = jnp.pad(bg_feat, ((0, m_pad - m), (0, 0)))
    fg_p = jnp.pad(fg_feat, ((0, n_pad - n), (0, 0)))
    inv_bg_p = jnp.pad(inv_bg, ((0, m_pad - m), (0, 0)))
    inv_fg_p = jnp.pad(inv_fg, ((0, 0), (0, n_pad - n)))

    # For f32 inputs with large D, feed bf16 operands to the MXU (f32 accum).
    if mxu_bf16 is None:
        mxu_bf16 = (bg_feat.dtype == jnp.float32) and (d >= 256)
    mxu_dtype = jnp.bfloat16 if mxu_bf16 else None

    kernel = functools.partial(_sim_min_loss_kernel, mxu_dtype=mxu_dtype)

    # Lane-dense partial sums: one (8, tn) block per (i, j) grid step.
    partials = pl.pallas_call(
        kernel,
        out_shape=jax.ShapeDtypeStruct((gi * 8, gj * tn), jnp.float32),
        grid=(gi, gj),
        in_specs=[
            pl.BlockSpec((tm, d), lambda i, j: (i, 0)),
            pl.BlockSpec((tn, d), lambda i, j: (j, 0)),
            pl.BlockSpec((tm, 1), lambda i, j: (i, 0)),
            pl.BlockSpec((1, tn), lambda i, j: (0, j)),
        ],
        out_specs=pl.BlockSpec((8, tn), lambda i, j: (i, j)),
        compiler_params=pltpu.CompilerParams(
            dimension_semantics=("parallel", "parallel"),
            vmem_limit_bytes=64 * 1024 * 1024),
    )(bg_p, fg_p, inv_bg_p, inv_fg_p)

    # Final reduction in plain JAX.  Padded rows/cols contribute exactly
    # -log(1 - CLAMP_MIN) each (their dot products are exactly 0, clamped up),
    # so subtract that closed-form correction instead of masking in-kernel.
    total = jnp.sum(partials)
    pad_entries = m_pad * n_pad - m * n
    if pad_entries:
        total = total - jnp.float32(pad_entries) * (
            -jnp.log(1.0 - jnp.float32(_CLAMP_MIN)))
    return total / jnp.float32(m * n)


def _reference(bg_feat, fg_feat):
    bg = bg_feat / jnp.maximum(
        jnp.linalg.norm(bg_feat, axis=1, keepdims=True), _EPS)
    fg = fg_feat / jnp.maximum(
        jnp.linalg.norm(fg_feat, axis=1, keepdims=True), _EPS)
    sim = jnp.clip(bg @ fg.T, _CLAMP_MIN, _CLAMP_MAX)
    return jnp.mean(-jnp.log(1.0 - sim))


if __name__ == "__main__":
    key = jax.random.PRNGKey(0)
    k1, k2 = jax.random.split(key)

    # Small shapes consistent with the module: M bg rows, N fg rows, feature D.
    M, N, D = 40, 300, 32
    bg_feat = jax.random.normal(k1, (M, D), dtype=jnp.float32)
    fg_feat = jax.random.normal(k2, (N, D), dtype=jnp.float32)

    ref = _reference(bg_feat, fg_feat)

    # Multi-tile path (3x3 grid, padding correction exercised on both axes).
    loss_tiled = sim_min_loss(bg_feat, fg_feat, tm=16, tn=128)
    jax.block_until_ready(loss_tiled)
    assert jnp.allclose(loss_tiled, ref, rtol=1e-4, atol=1e-5), (loss_tiled, ref)

    # Default (auto) tiles: single (i, j) step, fg fully resident in VMEM.
    loss_default = sim_min_loss(bg_feat, fg_feat)
    jax.block_until_ready(loss_default)
    assert jnp.allclose(loss_default, ref, rtol=1e-4, atol=1e-5), (loss_default, ref)

    print("KERNEL_OK")
</pallas_src>

<mosaic_0001>
module attributes {stable_mosaic.version = 11 : i64} {
  func.func @_sim_min_loss_kernel(%arg0: i32, %arg1: i32, %arg2: memref<16x32xf32, #tpu.memory_space<vmem>>, %arg3: memref<128x32xf32, #tpu.memory_space<vmem>>, %arg4: memref<16x1xf32, #tpu.memory_space<vmem>>, %arg5: memref<1x128xf32, #tpu.memory_space<vmem>>, %arg6: memref<8x128xf32, #tpu.memory_space<vmem>>) attributes {dimension_semantics = [#tpu.dimension_semantics<parallel>, #tpu.dimension_semantics<parallel>], iteration_bounds = array<i64: 3, 3>, scalar_prefetch = 0 : i64, scratch_operands = 0 : i64, tpu.core_type = #tpu.core_type<tc>, window_params = [{transform_indices = @transform_0, window_bounds = array<i64: 16, 32>}, {transform_indices = @transform_1, window_bounds = array<i64: 128, 32>}, {transform_indices = @transform_2, window_bounds = array<i64: 16, 1>}, {transform_indices = @transform_3, window_bounds = array<i64: 1, 128>}, {transform_indices = @transform_4, window_bounds = array<i64: 8, 128>}]} {
    %c0 = arith.constant 0 : index
    %c0_0 = arith.constant 0 : index
    %0 = vector.load %arg2[%c0, %c0_0] : memref<16x32xf32, #tpu.memory_space<vmem>>, vector<16x32xf32>
    %c0_1 = arith.constant 0 : index
    %c0_2 = arith.constant 0 : index
    %1 = vector.load %arg3[%c0_1, %c0_2] : memref<128x32xf32, #tpu.memory_space<vmem>>, vector<128x32xf32>
    %c0_3 = arith.constant 0 : index
    %c0_4 = arith.constant 0 : index
    %2 = vector.load %arg4[%c0_3, %c0_4] : memref<16x1xf32, #tpu.memory_space<vmem>>, vector<16x1xf32>
    %c0_5 = arith.constant 0 : index
    %c0_6 = arith.constant 0 : index
    %3 = vector.load %arg5[%c0_5, %c0_6] : memref<1x128xf32, #tpu.memory_space<vmem>>, vector<1x128xf32>
    %cst = arith.constant dense<0.000000e+00> : vector<16x128xf32>
    %4 = tpu.matmul %0, %1, %cst {dimension_numbers = #tpu.dot_dimension_numbers<[1], [1], [0], [0], [0, 0, 1, 0], [], []>} : vector<16x32xf32>, vector<128x32xf32>, vector<16x128xf32> -> vector<16x128xf32>
    %5 = vector.extract_strided_slice %4 {offsets = [0, 0], sizes = [8, 128], strides = [1, 1]} : vector<16x128xf32> to vector<8x128xf32>
    %6 = vector.extract_strided_slice %2 {offsets = [0, 0], sizes = [8, 1], strides = [1, 1]} : vector<16x1xf32> to vector<8x1xf32>
    %7 = vector.broadcast %6 : vector<8x1xf32> to vector<8x128xf32>
    %8 = arith.mulf %5, %7 : vector<8x128xf32>
    %9 = vector.broadcast %3 : vector<1x128xf32> to vector<8x128xf32>
    %10 = arith.mulf %8, %9 : vector<8x128xf32>
    %cst_7 = arith.constant 5.000000e-04 : f32
    %cst_8 = arith.constant 0.999499976 : f32
    %11 = vector.broadcast %cst_7 : f32 to vector<8x128xf32>
    %12 = arith.maximumf %11, %10 : vector<8x128xf32>
    %13 = vector.broadcast %cst_8 : f32 to vector<8x128xf32>
    %14 = arith.minimumf %13, %12 : vector<8x128xf32>
    %cst_9 = arith.constant 1.000000e+00 : f32
    %15 = vector.broadcast %cst_9 : f32 to vector<8x128xf32>
    %16 = arith.subf %15, %14 : vector<8x128xf32>
    %17 = math.log %16 : vector<8x128xf32>
    %cst_10 = arith.constant 0.000000e+00 : f32
    %18 = vector.broadcast %cst_10 : f32 to vector<8x128xf32>
    %19 = arith.subf %18, %17 : vector<8x128xf32>
    %20 = vector.extract_strided_slice %4 {offsets = [8, 0], sizes = [8, 128], strides = [1, 1]} : vector<16x128xf32> to vector<8x128xf32>
    %21 = vector.extract_strided_slice %2 {offsets = [8, 0], sizes = [8, 1], strides = [1, 1]} : vector<16x1xf32> to vector<8x1xf32>
    %22 = vector.broadcast %21 : vector<8x1xf32> to vector<8x128xf32>
    %23 = arith.mulf %20, %22 : vector<8x128xf32>
    %24 = vector.broadcast %3 : vector<1x128xf32> to vector<8x128xf32>
    %25 = arith.mulf %23, %24 : vector<8x128xf32>
    %cst_11 = arith.constant 5.000000e-04 : f32
    %cst_12 = arith.constant 0.999499976 : f32
    %26 = vector.broadcast %cst_11 : f32 to vector<8x128xf32>
    %27 = arith.maximumf %26, %25 : vector<8x128xf32>
    %28 = vector.broadcast %cst_12 : f32 to vector<8x128xf32>
    %29 = arith.minimumf %28, %27 : vector<8x128xf32>
    %cst_13 = arith.constant 1.000000e+00 : f32
    %30 = vector.broadcast %cst_13 : f32 to vector<8x128xf32>
    %31 = arith.subf %30, %29 : vector<8x128xf32>
    %32 = math.log %31 : vector<8x128xf32>
    %cst_14 = arith.constant 0.000000e+00 : f32
    %33 = vector.broadcast %cst_14 : f32 to vector<8x128xf32>
    %34 = arith.subf %33, %32 : vector<8x128xf32>
    %35 = arith.addf %19, %34 : vector<8x128xf32>
    %c0_15 = arith.constant 0 : index
    %c0_16 = arith.constant 0 : index
    %36 = vector.load %arg6[%c0_15, %c0_16] : memref<8x128xf32, #tpu.memory_space<vmem>>, vector<8x128xf32>
    tpu.vector_store %arg6[%c0_15, %c0_16], %35 {strides = array<i32>} : memref<8x128xf32, #tpu.memory_space<vmem>>, vector<8x128xf32>,
    return
  }
  func.func @transform_0(%arg0: i32, %arg1: i32) -> (i32, i32) {
    %c0_i32 = arith.constant 0 : i32
    %c0_i32_0 = arith.constant 0 : i32
    return %arg0, %c0_i32 : i32, i32
  }
  func.func @transform_1(%arg0: i32, %arg1: i32) -> (i32, i32) {
    %c0_i32 = arith.constant 0 : i32
    %c0_i32_0 = arith.constant 0 : i32
    return %arg1, %c0_i32 : i32, i32
  }
  func.func @transform_2(%arg0: i32, %arg1: i32) -> (i32, i32) {
    %c0_i32 = arith.constant 0 : i32
    %c0_i32_0 = arith.constant 0 : i32
    return %arg0, %c0_i32 : i32, i32
  }
  func.func @transform_3(%arg0: i32, %arg1: i32) -> (i32, i32) {
    %c0_i32 = arith.constant 0 : i32
    %c0_i32_0 = arith.constant 0 : i32
    return %c0_i32, %arg1 : i32, i32
  }
  func.func @transform_4(%arg0: i32, %arg1: i32) -> (i32, i32) {
    %c0_i32 = arith.constant 0 : i32
    return %arg0, %arg1 : i32, i32
  }
}

</mosaic_0001>

<bundles_post_ra>
// kernel: tpu_custom_call.1
= control target key start
LH: loop header
LB: loop body
LE: loop exit
PB: predicated region body
PF: predicated region fallthrough
CT: control target
= control target key end

     0   :  { %9 = vsyncpa [#allocation3], 0  ;;  %s972_s0 = inlined_call_operand.vmem [shape: f32[48,32], index: 0, kind: input, shape index: {}]   ;;  %s973_s1 = inlined_call_operand.vmem [shape: f32[384,32], index: 1, kind: input, shape index: {}]   ;;  %s974_s2 = inlined_call_operand.vmem [shape: f32[48,1], index: 2, kind: input, shape index: {}]   ;;  %s975_s3 = inlined_call_operand.vmem [shape: f32[1,384], index: 3, kind: input, shape index: {}]   ;;  %s976_s4 = inlined_call_operand.hbm [shape: f32[24,384], index: 4, kind: output, shape index: {}]  }
   0x1   :  { %11 = vsyncpa [#allocation3 + $0x1], 0  ;;  %s774_s15 = smov 0   ;;  %s776_s16 = smov 0  }
   0x2   :  { %s778_s17 = smov 0   ;;  %s780_s18 = smov 0  }
   0x3   :  { %s782_s19 = smov 0   ;;  %s784_s20 = smov 0  }
   0x4   :  { %s786_s21 = smov 0   ;;  %s788_s22 = smov 0  }
   0x5 LB: > { %s523_s23 = sadd.s32 4294967295, %s746_s22   ;;  %s524_s24 = sadd.s32 4294967294, %s746_s22   ;;  %s746_s22 = sphi %s788_s22, %s17_s22   ;;  %s742_s21 = sphi %s786_s21, %s985_s21   ;;  %s738_s20 = sphi %s784_s20, %s984_s20   ;;  %s734_s19 = sphi %s782_s19, %s983_s19   ;;  %s730_s18 = sphi %s780_s18, %s982_s18   ;;  %s726_s17 = sphi %s778_s17, %s981_s17   ;;  %s722_s16 = sphi %s776_s16, %s980_s16   ;;  %s718_s15 = sphi %s774_s15, %s979_s15  }
   0x6   : > { %s26_s25 = sadd.s32 1, %s738_s20  ;;  %s29_s26 = sadd.s32 1, %s742_s21 }
   0x7   : > { %p27_p0 = scmp.ge.s32.totalorder %s26_s25, 3  ;;  %p152_p1 = scmp.ne.s32.totalorder %s726_s17, %s722_s16 }
   0x8   : > { %p153_p2 = scmp.eq.s32.totalorder %s523_s23, 8  ;;  %p158_p5 = scmp.ne.s32.totalorder %s722_s16, %s718_s15 }
   0x9   : > { %s987_s25 = smov (%p27_p0, %s26_s25), 0  ;;  %s989_s26 = smov (!%p27_p0, %s29_s26), %s742_s21 }
   0xa   : > { %s138_s27 = ssub.s32 %s738_s20, %s987_s25  ;;  %p825_p3 = por %p153_p2, %p152_p1 }
   0xb   : > { %p31_p4 = scmp.ge.s32.totalorder %s989_s26, 3  ;;  %p159_p6 = scmp.eq.s32.totalorder %s524_s24, 8 }
   0xc   : > { %p527_p7 = scmp.ge.s32.totalorder %s746_s22, 1  ;;  %p210_p9 = scmp.lt.s32.totalorder %s746_s22, 10 }
   0xd   : > { %s991_s26 = smov (%p31_p4, %s989_s26), 0  ;;  %p834_p8 = por %p159_p6, %p158_p5 }
   0xe   : > { %s137_s30 = ssub.s32 %s742_s21, %s991_s26  ;;  %s142_s5 = sadd.s32 1, %s726_s17 }
   0xf   : > { %s139_s6 = sor.u32 %s138_s27, %s137_s30  ;;  %p211_p10 = pnand %p527_p7, %p210_p9 }
  0x10   : > { %p140_p11 = scmp.eq.s32.totalorder %s139_s6, 0  ;;  %s531_s8 = sshll.u32 (!%p211_p10), %s730_s18, 4 }
  0x11   : > { %214 = sbr.rel (%p211_p10) target bundleno = 242 (0xf2), region = 36  ;;  %p256_p12 = scmp.lt.s32.totalorder (!%p211_p10), %s531_s8, 47 }
  0x12   : > { %s843_s7 = scalar_select %p140_p11, %s726_s17, %s142_s5  }
  0x13   : > { %s529_s13 = sshll.u32 (!%p211_p10), %s734_s19, 1  ;;  %p267_p0 = scmp.lt.s32.totalorder (!%p211_p10), %s730_s18, 2 }
  0x14   : > { %p250_p13 = scmp.lt.s32.totalorder (!%p211_p10), %s529_s13, 5 }
  0x16   : > { %s993_s8 = smov (!%p256_p12, %s531_s8), 47  ;;  %vm291_vm0 = vcmask 261120   ;;  %s995_s13 = smov (!%p250_p13, %s529_s13), 5  ;;  %v748_v9 = vmov 0  }
  0x17   : > { %s532_s9 = sshll.u32 %s993_s8, 3  ;;  %s530_s14 = sshll.u32 %s995_s13, 3  ;;  %646 = vset.pattern.permute.xlu0 %v748_v9 }
  0x18   : > { %s849_s12 = scalar_lea.vmem %s973_s1, %s532_s9  ;;  %s265_s27 = scalar_lea.vmem %s974_s2, %s530_s14 }
  0x19   : > { %v287_v0 = vld [vmem:[%s849_s12 + $0x78] sm:$0xff]  ;;  %v286_v1 = vld [vmem:[%s849_s12 + $0x70] sm:$0xff]  ;;  %v285_v2 = vld [vmem:[%s849_s12 + $0x68] sm:$0xff]  ;;  %s881_s30 = scalar_select %p267_p0, %s730_s18, 2 }
  0x1a   : > { %535 = vmatpush.xpose.msk.msra.mxu0 %vm291_vm0, %v287_v0  ;;  %557 = vmatpush.xpose.msk.msra.mxu1 %vm291_vm0, %v287_v0  ;;  %v284_v3 = vld [vmem:[%s849_s12 + $0x60] sm:$0xff]  ;;  %v283_v4 = vld [vmem:[%s849_s12 + $0x58] sm:$0xff]  ;;  %v282_v5 = vld [vmem:[%s849_s12 + $0x50] sm:$0xff]  ;;  %s253_s11 = scalar_lea.vmem %s972_s0, %s530_s14  ;;  %s573_s13 = smul.u32 3, %s734_s19 }
  0x1b   : > { %v281_v6 = vld [vmem:[%s849_s12 + $0x48] sm:$0xff]  ;;  %v288_v7 = vld [vmem:[%s265_s27] sm:$0xff]  ;;  %s269_s8 = scalar_lea.vmem %s975_s3, %s881_s30  ;;  %v279_v10 = vld [vmem:[%s849_s12 + $0x38] sm:$0xff]  ;;  %s246_s14 = sand.u32 1, %s722_s16  }
  0x1c   : > { %v280_v8 = vld [vmem:[%s849_s12 + $0x40] sm:$0xff]  ;;  %371 = vperm.xlu0 %646, %v288_v7   ;;  %v289_v11 = vld [vmem:[%s265_s27 + $0x8] sm:$0xff]  ;;  %v278_v12 = vld [vmem:[%s849_s12 + $0x30] sm:$0xff]  ;;  %s411_s24 = sadd.s32 %s730_s18, %s573_s13  ;;  %s528_s27 = sshll.u32 %s246_s14, 3 }
  0x1d   : > { %v277_v13 = vld [vmem:[%s849_s12 + $0x28] sm:$0xff]  ;;  %v276_v14 = vld [vmem:[%s849_s12 + $0x20] sm:$0xff]  ;;  %v275_v15 = vld [vmem:[%s849_s12 + $0x18] sm:$0xff]  ;;  %s554_s30 = sshll.u32 %s411_s24, 3  ;;  %s248_s9 = scalar_lea.vmem [#allocation2], %s528_s27 }
  0x1e   : > { %536 = vmatpush.xpose.msk.msra.mxu0 %vm291_vm0, %v286_v1  ;;  %558 = vmatpush.xpose.msk.msra.mxu1 %vm291_vm0, %v286_v1  ;;  %v274_v16 = vld [vmem:[%s849_s12 + $0x10] sm:$0xff]  ;;  %v273_v17 = vld [vmem:[%s849_s12 + $0x8] sm:$0xff]  ;;  %v272_v18 = vld [vmem:[%s849_s12] sm:$0xff]  ;;  %s415_s19 = sshll.u32 %s248_s9, 4  ;;  %s401_s18 = scalar_lea.sflag [#allocation3], %s246_s14  ;;  %s416_s19 = int_to_ptr.vmem [resolvable:$true] %s415_s19 }
  0x1f   : > { %v270_v19 = vld [vmem:[%s253_s11] sm:$0xff]  ;;  %v271_v20 = vld [vmem:[%s253_s11 + $0x8] sm:$0xff]  ;;  %s672_s24 = scalar_lea.hbm %s976_s4, 72 }
  0x20   : > { %v647_v23 = vld [vmem:[%s269_s8] ss:$0 sm:$0xff]  ;;  %s413_s8 = scalar_lea.hbm %s976_s4, %s554_s30 }
  0x21   : > { %s417_s10 = sshll.u32 %s413_s8, 4  ;;  %s418_s10 = int_to_ptr.hbm [resolvable:$true] %s417_s10 }
  0x22   : > { %537 = vmatpush.xpose.msk.msra.mxu0 %vm291_vm0, %v285_v2  ;;  %559 = vmatpush.xpose.msk.msra.mxu1 %vm291_vm0, %v285_v2  ;;  %s666_s11 = sshra.s32 %s418_s10, 4  ;;  %s667_s11 = int_to_ptr.hbm [resolvable:$true] %s666_s11 }
  0x23   : > { %s668_s23 = scalar_lea.hbm %s667_s11, 8  ;;  %p673_p5 = scmp.lt.s32.totalorder %s667_s11, %s976_s4 }
  0x24   : > { %387 = vperm.xlu0 %646, %v289_v11   ;;  %p669_p1 = scmp.ne.s32.totalorder %s667_s11, %s668_s23  ;;  %p674_p6 = scmp.lt.s32.totalorder %s672_s24, %s668_s23 }
  0x26   : > { %538 = vmatpush.xpose.msk.msra.mxu0 %vm291_vm0, %v284_v3  ;;  %560 = vmatpush.xpose.msk.msra.mxu1 %vm291_vm0, %v284_v3  ;;  %p670_p2 = pnand %p669_p1, %p825_p3  ;;  %p675_p7 = por %p674_p6, %p673_p5 }
  0x28   : > { %p671_p4 = pneg %p670_p2 }
  0x2a   : > { %539 = vmatpush.xpose.msk.msra.mxu0 %vm291_vm0, %v283_v4  ;;  %561 = vmatpush.xpose.msk.msra.mxu1 %vm291_vm0, %v283_v4  ;;  %p676_p9 = pnand %p675_p7, %p671_p4 }
  0x2e   : > { %540 = vmatpush.xpose.msk.msra.mxu0 %vm291_vm0, %v282_v5  ;;  %562 = vmatpush.xpose.msk.msra.mxu1 %vm291_vm0, %v282_v5 }
  0x32   : > { %541 = vmatpush.xpose.msk.msra.mxu0 %vm291_vm0, %v281_v6  ;;  %563 = vmatpush.xpose.msk.msra.mxu1 %vm291_vm0, %v281_v6 }
  0x36   : > { %542 = vmatpush.xpose.msk.msra.mxu0 %vm291_vm0, %v280_v8  ;;  %564 = vmatpush.xpose.msk.msra.mxu1 %vm291_vm0, %v280_v8 }
  0x3a   : > { %543 = vmatpush.xpose.msk.msra.mxu0 %vm291_vm0, %v279_v10  ;;  %565 = vmatpush.xpose.msk.msra.mxu1 %vm291_vm0, %v279_v10 }
  0x3e   : > { %544 = vmatpush.xpose.msk.msra.mxu0 %vm291_vm0, %v278_v12  ;;  %566 = vmatpush.xpose.msk.msra.mxu1 %vm291_vm0, %v278_v12 }
  0x42   : > { %545 = vmatpush.xpose.msk.msra.mxu0 %vm291_vm0, %v277_v13  ;;  %567 = vmatpush.xpose.msk.msra.mxu1 %vm291_vm0, %v277_v13 }
  0x46   : > { %546 = vmatpush.xpose.msk.msra.mxu0 %vm291_vm0, %v276_v14  ;;  %568 = vmatpush.xpose.msk.msra.mxu1 %vm291_vm0, %v276_v14 }
  0x4a   : > { %547 = vmatpush.xpose.msk.msra.mxu0 %vm291_vm0, %v275_v15  ;;  %569 = vmatpush.xpose.msk.msra.mxu1 %vm291_vm0, %v275_v15 }
  0x4e   : > { %548 = vmatpush.xpose.msk.msra.mxu0 %vm291_vm0, %v274_v16  ;;  %570 = vmatpush.xpose.msk.msra.mxu1 %vm291_vm0, %v274_v16 }
  0x52   : > { %549 = vmatpush.xpose.msk.msra.mxu0 %vm291_vm0, %v273_v17  ;;  %571 = vmatpush.xpose.msk.msra.mxu1 %vm291_vm0, %v273_v17 }
  0x56   : > { %550 = vmatpush.xpose.msk.msra.mxu0 %vm291_vm0, %v272_v18  ;;  %572 = vmatpush.xpose.msk.msra.mxu1 %vm291_vm0, %v272_v18 }
  0x59   : > { %551 = vmatmul.msk.f32.vlgmr.msra.gmra.mxu0 %vm291_vm0, %v270_v19  ;;  %552 = vmatmul.msk.f32.vlgmr.msra.gmra.mxu1 %vm291_vm0, %v271_v20 }
  0x8e   : > { %v372_v21 = vpop.permute.xlu0 %371 }
  0x96   : > { %v388_v22 = vpop.permute.xlu0 %387 }
  0xd6   : > { %v363_v24 = vpop.f32.mrf.mxu0  ;;  %v366_v25 = vpop.f32.mrf.mxu1 }
  0xd7   : > { %v374_v26 = vmul.f32 %v372_v21, %v363_v24  ;;  %v390_v27 = vmul.f32 %v388_v22, %v366_v25 }
  0xd9   : > { %v378_v28 = vmul.f32 %v647_v23, %v374_v26  ;;  %v391_v29 = vmul.f32 %v647_v23, %v390_v27 }
  0xdb   : > { %v379_v30 = vmax.f32 %v378_v28, 0.0005  ;;  %v392_v31 = vmax.f32 %v391_v29, 0.0005 }
  0xdd   : > { %v380_v32 = vmin.f32 %v379_v30, 0.9995  ;;  %v393_v33 = vmin.f32 %v392_v31, 0.9995 }
  0xdf   : > { %v381_v34 = vsub.f32 1.0, %v380_v32  ;;  %v394_v35 = vsub.f32 1.0, %v393_v33 }
  0xe1   : > { %648 = vlog2.f32 %v381_v34 }
  0xe2   : > { %650 = vlog2.f32 %v394_v35 }
  0xe7   : > { %v649_v36 = vpop.eup %648 }
  0xe8   : > { %v651_v37 = vpop.eup %650  ;;  %v383_v38 = vmul.f32 0.6931472, %v649_v36 }
  0xe9   : > { %v396_v39 = vmul.f32 0.6931472, %v651_v37 }
  0xea   : > { %v384_v40 = vsub.f32 0.0, %v383_v38 }
  0xeb   : > { %v397_v41 = vsub.f32 0.0, %v396_v39 }
  0xed   : > { %v398_v42 = vadd.f32 %v397_v41, %v384_v40 }
  0xef   : > { %399 = vst [vmem:[%s248_s9] sm:$0xff] %v398_v42 }
  0xf0   : > { %679 = shalt.err (!%p676_p9)
}
  0xf1   : > { %574 = dma.vmem_to_hbm [thread:$0]  (%p825_p3), %s416_s19, 128, %s418_s10, %s401_s18  }
  0xf2 PF: > { %p580_p10 = scmp.ge.s32.totalorder %s746_s22, 2  ;;  %s429_s14 = sand.u32 1, %s718_s15  }
  0xf3   : > { %s430_s5 = scalar_lea.sflag [#allocation3], %s429_s14 }
  0xf4   : > { %p577_p11 = pnand %p580_p10, %p834_p8 }
  0xf6   : > { %p578_p12 = pneg %p577_p11 }
  0xf8   : > { %713 = dma.done.wait (%p578_p12), %s430_s5, 128  }
  0xf9   : > { %715 = vsyncadd (%p578_p12), %s430_s5, 4294967168  ;;  %s17_s22 = sadd.s32 1, %s746_s22   ;;  %s979_s15 = smov %s722_s16 }
  0xfa   : > { %p14_p13 = scmp.ge.s32.totalorder %s17_s22, 11   ;;  %s980_s16 = smov %s726_s17 }
  0xfb   : > { %s981_s17 = smov %s843_s7  ;;  %s982_s18 = smov %s738_s20 }
  0xfc   : > { %s983_s19 = smov %s742_s21  ;;  %s984_s20 = smov %s987_s25 }
  0xfd   : > { %s985_s21 = smov %s991_s26  ;;  %16 = sbr.rel (!%p14_p13) target bundleno = 5 (0x5), region = 80 }
 0x102   :  { %436 = vsyncpa [#allocation3], 1 }
 0x103   :  { %438 = vsyncpa [#allocation3 + $0x1], 1 }

</bundles_post_ra>
